<compile_context>
chip_gen: v6e
topology: v6e:2x2x1
jax: 0.10.0
libtpu: 0.0.40
codegen_flags: <defaults>
</compile_context>

<pallas_src>
import functools

import jax
import jax.numpy as jnp
from jax.experimental import pallas as pl
from jax.experimental.pallas import tpu as pltpu

_CLAMP_MIN = 1e-12
_CLAMP_MAX = 1.0e12


def _rnd_up(v, m):
    return ((v + m - 1) // m) * m


def _center_loss_kernel(feat_ref, lab_ref, ct_ref, c2_ref, out_ref, acc_ref, *,
                        tile_b, n_inner, batch, num_classes, inv_batch):
    o = pl.program_id(0)
    i = pl.program_id(1)

    @pl.when(i == 0)
    def _init():
        acc_ref[...] = jnp.zeros_like(acc_ref)

    f = feat_ref[...].astype(jnp.float32)                          # (TB, D)
    x2 = jnp.sum(f * f, axis=-1, keepdims=True)                    # (TB, 1)
    xc = jnp.dot(f, ct_ref[...], preferred_element_type=jnp.float32)  # (TB, C) MXU
    distmat = x2 + c2_ref[...] - 2.0 * xc                          # (TB, C)

    # Class mask built in-kernel from the label column (no streamed one-hot).
    classes = jax.lax.broadcasted_iota(jnp.int32, (tile_b, num_classes), 1)
    mask = (lab_ref[...] == classes).astype(jnp.float32)           # (TB, C)
    dist = jnp.clip(distmat * mask, _CLAMP_MIN, _CLAMP_MAX)        # (TB, C)
    row_sum = jnp.sum(dist, axis=-1, keepdims=True)                # (TB, 1)

    # In-kernel row validity: kills partial/clamped-block garbage rows
    # post-clamp (jnp.where, so NaN/Inf garbage never propagates).
    tile_idx = o * n_inner + i
    rows = jax.lax.broadcasted_iota(jnp.int32, (tile_b, 1), 0)
    valid = (tile_idx * tile_b + rows) < batch
    acc_ref[...] = acc_ref[...] + jnp.sum(jnp.where(valid, row_sum, 0.0))

    @pl.when(i == n_inner - 1)
    def _finalize():
        out_ref[...] = jnp.broadcast_to(acc_ref[...] * inv_batch, out_ref.shape)


def center_loss(x, labels, centers, *, max_tile_rows=4096):
    """Pallas implementation of CenterLoss.forward.

    x:       (B, feat_dim) float
    labels:  (B,) int, values in [0, num_classes)
    centers: (num_classes, feat_dim) float
    Returns a scalar f32 loss, identical to the PyTorch forward.
    """
    batch = x.shape[0]
    num_classes, feat_dim = centers.shape
    x = x.reshape(batch, -1)
    if x.shape[1] != feat_dim:
        raise ValueError(
            f"Center's dim {feat_dim} != input feature dim {x.shape[1]}")
    if x.dtype not in (jnp.dtype(jnp.float32), jnp.dtype(jnp.bfloat16)):
        x = x.astype(jnp.float32)
    labels = labels.reshape(batch, 1).astype(jnp.int32)
    centers = centers.astype(jnp.float32)

    centers_t = centers.T                                  # (D, C) f32
    c2 = jnp.sum(centers * centers, axis=1)[None, :]       # (1, C) f32

    # ---- batch tile sizing: big DMAs, VMEM bounded on every generation ----
    feat_row_vmem = _rnd_up(max(feat_dim, 1), 128) * x.dtype.itemsize
    rows_from_feat = (8 * 1024 * 1024) // feat_row_vmem              # ~8 MiB/buffer
    rows_from_cls = (2 * 1024 * 1024) // (_rnd_up(num_classes, 128) * 4)
    tile_b = min(4096, int(max_tile_rows), int(rows_from_feat), int(rows_from_cls))
    tile_b = max(8, (tile_b // 8) * 8)
    if batch <= tile_b:
        tile_b = batch                  # single full-extent tile
    num_tiles = (batch + tile_b - 1) // tile_b
    n_outer = 2 if num_tiles >= 2 else 1        # v7x: one chunk per TensorCore
    n_inner = (num_tiles + n_outer - 1) // n_outer
    last_tile = num_tiles - 1

    def row_map(o, i):
        t = o * n_inner + i
        return (jnp.minimum(t, last_tile), 0)   # clamp fully-OOB tiles

    kernel = functools.partial(
        _center_loss_kernel, tile_b=tile_b, n_inner=n_inner, batch=batch,
        num_classes=num_classes, inv_batch=1.0 / float(batch))

    # VMEM budget estimate (double-buffered blocks + f32 temps), kept < v7x 64 MiB.
    pad_rows = _rnd_up(tile_b, 8)
    pad_cls = _rnd_up(num_classes, 128)
    est = (2 * (pad_rows * feat_row_vmem               # feat blocks
                + pad_rows * 128 * 4                   # label blocks
                + _rnd_up(feat_dim, 8) * pad_cls * 4   # centers^T
                + 8 * pad_cls * 4                      # ||c||^2
                + 8 * 128 * 4)                         # out block
           + 6 * pad_rows * pad_cls * 4                # (TB, C) temporaries
           + (1 << 20))
    vmem_limit = int(min(max(est, 32 * 1024 * 1024), 50 * 1024 * 1024))

    flops = 2 * batch * feat_dim * num_classes + 4 * batch * feat_dim
    bytes_accessed = (batch * feat_dim * x.dtype.itemsize + batch * 4
                      + feat_dim * num_classes * 4 + num_classes * 4
                      + n_outer * 8 * 128 * 4)

    out = pl.pallas_call(
        kernel,
        out_shape=jax.ShapeDtypeStruct((n_outer * 8, 128), jnp.float32),
        grid_spec=pltpu.PrefetchScalarGridSpec(
            num_scalar_prefetch=0,
            grid=(n_outer, n_inner),
            in_specs=[
                pl.BlockSpec((tile_b, feat_dim), row_map),                # feat
                pl.BlockSpec((tile_b, 1), row_map),                       # labels
                pl.BlockSpec((feat_dim, num_classes), lambda o, i: (0, 0)),  # C^T
                pl.BlockSpec((1, num_classes), lambda o, i: (0, 0)),      # ||c||^2
            ],
            out_specs=pl.BlockSpec((8, 128), lambda o, i: (o, 0)),
            scratch_shapes=[pltpu.VMEM((1, 1), jnp.float32)],
        ),
        compiler_params=pltpu.CompilerParams(
            dimension_semantics=("parallel", "arbitrary"),
            vmem_limit_bytes=vmem_limit,
        ),
        cost_estimate=pl.CostEstimate(
            flops=int(flops), transcendentals=0,
            bytes_accessed=int(bytes_accessed)),
    )(x, labels, centers_t, c2)

    # One partial sum per outer (per-TensorCore) chunk, already scaled by 1/B.
    return jnp.sum(out[0::8, 0])


def _reference(x, labels, centers):
    """Pure-JAX mirror of the PyTorch forward."""
    B = x.shape[0]
    C = centers.shape[0]
    xf = x.reshape(B, -1).astype(jnp.float32)
    cf = centers.astype(jnp.float32)
    distmat = (jnp.sum(xf * xf, axis=1, keepdims=True)
               + jnp.sum(cf * cf, axis=1)[None, :]
               - 2.0 * xf @ cf.T)
    mask = (labels[:, None] == jnp.arange(C)[None, :]).astype(jnp.float32)
    dist = jnp.clip(distmat * mask, _CLAMP_MIN, _CLAMP_MAX)
    return jnp.sum(dist) / B


if __name__ == "__main__":
    key = jax.random.PRNGKey(0)
    kc, kx, kl, kc2, kx2, kl2 = jax.random.split(key, 6)

    # Config 1: small, module-consistent (num_classes=10 default), single tile.
    num_classes, feat_dim, batch = 10, 32, 8
    centers = jax.random.normal(kc, (num_classes, feat_dim), jnp.float32)
    x = jax.random.normal(kx, (batch, feat_dim), jnp.float32)
    labels = jax.random.randint(kl, (batch,), 0, num_classes, dtype=jnp.int32)

    loss = jax.block_until_ready(center_loss(x, labels, centers))
    ref = jax.block_until_ready(_reference(x, labels, centers))
    assert jnp.allclose(loss, ref, rtol=1e-5, atol=1e-6), (loss, ref)

    # Config 2: exercises the tiled path at small scale — 2-wide parallel axis,
    # a clamped fully-OOB tile (odd tile count) and a partial last block.
    c2n, d2n, b2n = 5, 96, 300
    centers_b = jax.random.normal(kc2, (c2n, d2n), jnp.float32)
    x_b = jax.random.normal(kx2, (b2n, d2n), jnp.float32)
    labels_b = jax.random.randint(kl2, (b2n,), 0, c2n, dtype=jnp.int32)

    loss_b = jax.block_until_ready(
        center_loss(x_b, labels_b, centers_b, max_tile_rows=128))
    ref_b = jax.block_until_ready(_reference(x_b, labels_b, centers_b))
    assert jnp.allclose(loss_b, ref_b, rtol=1e-4, atol=1e-5), (loss_b, ref_b)

    print("KERNEL_OK")
</pallas_src>

<mosaic_0001>
module attributes {stable_mosaic.version = 11 : i64} {
  func.func @_center_loss_kernel(%arg0: i32, %arg1: i32, %arg2: memref<8x32xf32, #tpu.memory_space<vmem>>, %arg3: memref<8x1xi32, #tpu.memory_space<vmem>>, %arg4: memref<32x10xf32, #tpu.memory_space<vmem>>, %arg5: memref<1x10xf32, #tpu.memory_space<vmem>>, %arg6: memref<8x128xf32, #tpu.memory_space<vmem>>, %arg7: memref<1x1xf32, #tpu.memory_space<vmem>>) attributes {dimension_semantics = [#tpu.dimension_semantics<parallel>, #tpu.dimension_semantics<arbitrary>], iteration_bounds = array<i64: 1, 1>, scalar_prefetch = 0 : i64, scratch_operands = 1 : i64, tpu.core_type = #tpu.core_type<tc>, window_params = [{transform_indices = @transform_0, window_bounds = array<i64: 8, 32>}, {transform_indices = @transform_1, window_bounds = array<i64: 8, 1>}, {pipeline_mode = #tpu.pipeline_mode<synchronous>, transform_indices = @transform_2, window_bounds = array<i64: 32, 10>}, {pipeline_mode = #tpu.pipeline_mode<synchronous>, transform_indices = @transform_3, window_bounds = array<i64: 1, 10>}, {transform_indices = @transform_4, window_bounds = array<i64: 8, 128>}]} {
    %c0_i32 = arith.constant 0 : i32
    %0 = arith.cmpi eq, %arg1, %c0_i32 : i32
    %1 = arith.extui %0 : i1 to i32
    %c0_i32_0 = arith.constant 0 : i32
    %2 = arith.cmpi ne, %1, %c0_i32_0 : i32
    scf.if %2 {
      %cst_22 = arith.constant 0.000000e+00 : f32
      %50 = vector.broadcast %cst_22 : f32 to vector<1x1xf32>
      %c0_23 = arith.constant 0 : index
      %c0_24 = arith.constant 0 : index
      %51 = vector.load %arg7[%c0_23, %c0_24] : memref<1x1xf32, #tpu.memory_space<vmem>>, vector<1x1xf32>
      tpu.vector_store %arg7[%c0_23, %c0_24], %50 {strides = array<i32>} : memref<1x1xf32, #tpu.memory_space<vmem>>, vector<1x1xf32>,
    } else {
    }
    %c0 = arith.constant 0 : index
    %c0_1 = arith.constant 0 : index
    %3 = vector.load %arg2[%c0, %c0_1] : memref<8x32xf32, #tpu.memory_space<vmem>>, vector<8x32xf32>
    %4 = arith.mulf %3, %3 : vector<8x32xf32>
    %cst = arith.constant dense<0.000000e+00> : vector<8xf32>
    %5 = vector.multi_reduction <add>, %4, %cst [1] : vector<8x32xf32> to vector<8xf32>
    %6 = vector.shape_cast %5 : vector<8xf32> to vector<8x1xf32>
    %c0_2 = arith.constant 0 : index
    %c0_3 = arith.constant 0 : index
    %7 = vector.load %arg4[%c0_2, %c0_3] : memref<32x10xf32, #tpu.memory_space<vmem>>, vector<32x10xf32>
    %cst_4 = arith.constant dense<0.000000e+00> : vector<8x10xf32>
    %8 = tpu.matmul %3, %7, %cst_4 {dimension_numbers = #tpu.dot_dimension_numbers<[1], [0], [0], [1], [0, 0, 1, 1], [], []>} : vector<8x32xf32>, vector<32x10xf32>, vector<8x10xf32> -> vector<8x10xf32>
    %c0_5 = arith.constant 0 : index
    %c0_6 = arith.constant 0 : index
    %9 = vector.load %arg5[%c0_5, %c0_6] : memref<1x10xf32, #tpu.memory_space<vmem>>, vector<1x10xf32>
    %10 = vector.broadcast %6 : vector<8x1xf32> to vector<8x10xf32>
    %11 = vector.broadcast %9 : vector<1x10xf32> to vector<8x10xf32>
    %12 = arith.addf %10, %11 : vector<8x10xf32>
    %cst_7 = arith.constant 2.000000e+00 : f32
    %13 = vector.broadcast %cst_7 : f32 to vector<8x10xf32>
    %14 = arith.mulf %13, %8 : vector<8x10xf32>
    %15 = arith.subf %12, %14 : vector<8x10xf32>
    %16 = tpu.iota {dimensions = array<i32: 1>} : vector<8x10xi32>
    %c0_8 = arith.constant 0 : index
    %c0_9 = arith.constant 0 : index
    %17 = vector.load %arg3[%c0_8, %c0_9] : memref<8x1xi32, #tpu.memory_space<vmem>>, vector<8x1xi32>
    %18 = vector.broadcast %17 : vector<8x1xi32> to vector<8x10xi32>
    %19 = arith.cmpi eq, %18, %16 : vector<8x10xi32>
    %20 = arith.extui %19 : vector<8x10xi1> to vector<8x10xi32>
    %21 = arith.sitofp %20 : vector<8x10xi32> to vector<8x10xf32>
    %22 = arith.mulf %15, %21 : vector<8x10xf32>
    %cst_10 = arith.constant 9.99999996E-13 : f32
    %cst_11 = arith.constant 9.99999995E+11 : f32
    %23 = vector.broadcast %cst_10 : f32 to vector<8x10xf32>
    %24 = arith.maximumf %23, %22 : vector<8x10xf32>
    %25 = vector.broadcast %cst_11 : f32 to vector<8x10xf32>
    %26 = arith.minimumf %25, %24 : vector<8x10xf32>
    %cst_12 = arith.constant dense<0.000000e+00> : vector<8xf32>
    %27 = vector.multi_reduction <add>, %26, %cst_12 [1] : vector<8x10xf32> to vector<8xf32>
    %28 = vector.shape_cast %27 : vector<8xf32> to vector<8x1xf32>
    %c1_i32 = arith.constant 1 : i32
    %29 = arith.muli %arg0, %c1_i32 : i32
    %30 = arith.addi %29, %arg1 : i32
    %31 = tpu.iota {dimensions = array<i32: 0>} : vector<8x1xi32>
    %c8_i32 = arith.constant 8 : i32
    %32 = arith.muli %30, %c8_i32 : i32
    %33 = vector.broadcast %32 : i32 to vector<8x1xi32>
    %34 = arith.addi %33, %31 : vector<8x1xi32>
    %c8_i32_13 = arith.constant 8 : i32
    %35 = vector.broadcast %c8_i32_13 : i32 to vector<8x1xi32>
    %36 = arith.cmpi slt, %34, %35 : vector<8x1xi32>
    %c0_14 = arith.constant 0 : index
    %c0_15 = arith.constant 0 : index
    %37 = vector.load %arg7[%c0_14, %c0_15] : memref<1x1xf32, #tpu.memory_space<vmem>>, vector<1x1xf32>
    %cst_16 = arith.constant 0.000000e+00 : f32
    %38 = vector.broadcast %cst_16 : f32 to vector<8x1xf32>
    %39 = arith.select %36, %28, %38 : vector<8x1xi1>, vector<8x1xf32>
    %40 = vector.shape_cast %39 : vector<8x1xf32> to vector<1x8x1xf32>
    %cst_17 = arith.constant dense<0.000000e+00> : vector<1xf32>
    %41 = vector.multi_reduction <add>, %40, %cst_17 [1, 2] : vector<1x8x1xf32> to vector<1xf32>
    %42 = vector.shape_cast %41 : vector<1xf32> to vector<1x1x1xf32>
    %43 = vector.extract %42[0, 0, 0] : f32 from vector<1x1x1xf32>
    %44 = vector.broadcast %43 : f32 to vector<1x1xf32>
    %45 = arith.addf %37, %44 : vector<1x1xf32>
    %c0_18 = arith.constant 0 : index
    %c0_19 = arith.constant 0 : index
    %46 = vector.load %arg7[%c0_18, %c0_19] : memref<1x1xf32, #tpu.memory_space<vmem>>, vector<1x1xf32>
    tpu.vector_store %arg7[%c0_18, %c0_19], %45 {strides = array<i32>} : memref<1x1xf32, #tpu.memory_space<vmem>>, vector<1x1xf32>,
    %c0_i32_20 = arith.constant 0 : i32
    %47 = arith.cmpi eq, %arg1, %c0_i32_20 : i32
    %48 = arith.extui %47 : i1 to i32
    %c0_i32_21 = arith.constant 0 : i32
    %49 = arith.cmpi ne, %48, %c0_i32_21 : i32
    scf.if %49 {
      %c0_22 = arith.constant 0 : index
      %c0_23 = arith.constant 0 : index
      %50 = vector.load %arg7[%c0_22, %c0_23] : memref<1x1xf32, #tpu.memory_space<vmem>>, vector<1x1xf32>
      %cst_24 = arith.constant 1.250000e-01 : f32
      %51 = vector.broadcast %cst_24 : f32 to vector<1x1xf32>
      %52 = arith.mulf %50, %51 : vector<1x1xf32>
      %53 = vector.shape_cast %52 : vector<1x1xf32> to vector<1x1xf32>
      %54 = vector.broadcast %53 : vector<1x1xf32> to vector<8x128xf32>
      %c0_25 = arith.constant 0 : index
      %c0_26 = arith.constant 0 : index
      %55 = vector.load %arg6[%c0_25, %c0_26] : memref<8x128xf32, #tpu.memory_space<vmem>>, vector<8x128xf32>
      tpu.vector_store %arg6[%c0_25, %c0_26], %54 {strides = array<i32>} : memref<8x128xf32, #tpu.memory_space<vmem>>, vector<8x128xf32>,
    } else {
    }
    return
  }
  func.func @transform_0(%arg0: i32, %arg1: i32) -> (i32, i32) {
    %c1_i32 = arith.constant 1 : i32
    %0 = arith.muli %arg0, %c1_i32 : i32
    %1 = arith.addi %0, %arg1 : i32
    %c0_i32 = arith.constant 0 : i32
    %2 = arith.minsi %1, %c0_i32 : i32
    %c0_i32_0 = arith.constant 0 : i32
    %c0_i32_1 = arith.constant 0 : i32
    return %2, %c0_i32_0 : i32, i32
  }
  func.func @transform_1(%arg0: i32, %arg1: i32) -> (i32, i32) {
    %c1_i32 = arith.constant 1 : i32
    %0 = arith.muli %arg0, %c1_i32 : i32
    %1 = arith.addi %0, %arg1 : i32
    %c0_i32 = arith.constant 0 : i32
    %2 = arith.minsi %1, %c0_i32 : i32
    %c0_i32_0 = arith.constant 0 : i32
    %c0_i32_1 = arith.constant 0 : i32
    return %2, %c0_i32_0 : i32, i32
  }
  func.func @transform_2(%arg0: i32, %arg1: i32) -> (i32, i32) {
    %c0_i32 = arith.constant 0 : i32
    %c0_i32_0 = arith.constant 0 : i32
    %c0_i32_1 = arith.constant 0 : i32
    return %c0_i32, %c0_i32_0 : i32, i32
  }
  func.func @transform_3(%arg0: i32, %arg1: i32) -> (i32, i32) {
    %c0_i32 = arith.constant 0 : i32
    %c0_i32_0 = arith.constant 0 : i32
    %c0_i32_1 = arith.constant 0 : i32
    return %c0_i32, %c0_i32_0 : i32, i32
  }
  func.func @transform_4(%arg0: i32, %arg1: i32) -> (i32, i32) {
    %c0_i32 = arith.constant 0 : i32
    %c0_i32_0 = arith.constant 0 : i32
    return %arg0, %c0_i32 : i32, i32
  }
}

</mosaic_0001>

<bundles_post_ra>
// kernel: tpu_custom_call.1
= control target key start
LH: loop header
LB: loop body
LE: loop exit
PB: predicated region body
PF: predicated region fallthrough
CT: control target
= control target key end

     0   :  { %v301_v1 = vmov 0.0   ;;  %vm302_vm0 = vmmov 0   ;;  %v303_v5 = vmov 0   ;;  %s354_s0 = inlined_call_operand.vmem [shape: f32[8,32], index: 0, kind: input, shape index: {}]   ;;  %s355_s1 = inlined_call_operand.vmem [shape: s32[8,1], index: 1, kind: input, shape index: {}]   ;;  %s356_s2 = inlined_call_operand.vmem [shape: f32[32,10], index: 2, kind: input, shape index: {}]   ;;  %s357_s3 = inlined_call_operand.vmem [shape: f32[1,10], index: 3, kind: input, shape index: {}]   ;;  %s358_s4 = inlined_call_operand.hbm [shape: f32[8,128], index: 4, kind: output, shape index: {}]  }
   0x1   :  { %v87_v0 = vld [vmem:[%s356_s2 + $0x18] sm:$0xff]  ;;  %260 = vmatprep.subr.mxu0 %v301_v1  ;;  %v86_v2 = vld [vmem:[%s356_s2 + $0x10] sm:$0xff]  ;;  %268 = vmatprep.mubr.msk.f32.mxu0 %vm302_vm0, %v301_v1  ;;  %v78_v3 = vld [vmem:[%s354_s0] sm:$0xff] }
   0x2   :  { %261 = vmatpush3.msra.mxu0 %v87_v0  ;;  %v79_v4 = vmul.f32 %v78_v3, %v78_v3  ;;  %277 = vset.pattern.permute.xlu0 %v303_v5 }
   0x3   :  { %9 = vsyncpa [#allocation4], 0  ;;  %262 = vmatprep.subr.mxu0 %v301_v1  ;;  %v85_v6 = vld [vmem:[%s356_s2 + $0x8] sm:$0xff]  ;;  %vm80_vm1 = vcmask 261120   ;;  %278 = vset.pattern.permute.xlu1 %v303_v5  ;;  %v84_v8 = vld [vmem:[%s356_s2] sm:$0xff]  ;;  %v171_v10 = vlaneseq  ;;  %vm183_vm3 = vcmask 80896  }
   0x4   :  { %263 = vmatpush3.msra.mxu0 %v86_v2  ;;  %v81_v7 = vsel %vm80_vm1, %v79_v4, 0.0  ;;  %v173_v9 = vld [vmem:[%s355_s1] sm:$0xff]  ;;  %vm196_vm4 = vcmask 7168   ;;  %vm76_vm5 = vcmask 0   ;;  %s304_s2 = smov [#allocation3]  }
   0x5   :  { %264 = vmatprep.subr.mxu0 %v301_v1  ;;  %82 = vadd.xlane.f32.xlu0 %v81_v7  ;;  %v172_v12 = vand.u32 127, %v171_v10  ;;  %v253_v14 = vld [vmem:[%s357_s3] ss:$0 sm:$0xff]  ;;  %77 = vst.msk [vmem:[#allocation2] sm:$0x1] %vm76_vm5, %v301_v1  ;;  %v218_v37 = vshrl.u32 %v171_v10, 7 }
   0x6   :  { %265 = vmatpush3.msra.mxu0 %v85_v6  ;;  %s232_s3 = sshll.u32 %s304_s2, 4  ;;  %s233_s3 = int_to_ptr.vmem [resolvable:$true] %s232_s3 }
   0x7   :  { %266 = vmatprep.subr.mxu0 %v301_v1  ;;  %v219_v38 = vsub.s32 0, %v218_v37  ;;  %s279_s28 = scalar_lea.vmem %s233_s3, 128  ;;  %p284_p1 = scmp.lt.s32.totalorder %s233_s3, %s233_s3 }
   0x8   :  { %267 = vmatpush3.msra.mxu0 %v84_v8  ;;  %p280_p0 = scmp.ne.s32.totalorder %s233_s3, %s279_s28  ;;  %p285_p2 = scmp.lt.s32.totalorder %s279_s28, %s279_s28 }
   0x9   :  { %269 = vmatmul.mubr.msk.f32.vlgmr.msra.gmra.mxu0 %vm80_vm1, %v78_v3 }
   0xa   :  { %p286_p3 = por %p285_p2, %p284_p1 }
   0xc   :  { %v194_v34 = vld [vmem:[#allocation2] sm:$0x1]  ;;  %p287_p4 = pnand %p286_p3, %p280_p0 }
  0x1b   :  { %175 = vperm.xlu0 %277, %v173_v9  }
  0x8e   :  { %v83_v11 = vpop.xlane.xlu0 %82 }
  0x8f   :  { %v168_v16 = vadd.f32 %v253_v14, %v83_v11 }
  0x96   :  { %v176_v13 = vpop.permute.xlu0 %175 }
  0x97   :  { %vm177_vm2 = vcmp.eq.s32.totalorder %v176_v13, %v172_v12 }
  0x98   :  { %v254_v18 = vsel %vm177_vm2, 1.0, %v301_v1 }
  0xc9   :  { %v157_v15 = vpop.f32.mrf.mxu0 }
  0xca   :  { %v169_v17 = vmul.f32 2.0, %v157_v15 }
  0xcb   :  { %v270_v19 = vpop.f32.mrf.mxu0 }
  0xcc   :  { %v170_v20 = vsub.f32 %v168_v16, %v169_v17 }
  0xce   :  { %v180_v21 = vmul.f32 %v254_v18, %v170_v20 }
  0xd0   :  { %v181_v22 = vmax.f32 %v180_v21, 1e-12 }
  0xd2   :  { %v182_v23 = vmin.f32 %v181_v22, 1e+12 }
  0xd4   :  { %v184_v24 = vsel %vm183_vm3, %v182_v23, 0.0 }
  0xd5   :  { %185 = vadd.xlane.f32.xlu1 %v184_v24 }
 0x15e   :  { %v186_v25 = vpop.xlane.xlu1 %185 }
 0x15f   :  { %v197_v26 = vsel %vm196_vm4, %v186_v25, 0.0 }
 0x160   :  { %198 = vadd.xlane.f32.xlu1 %v197_v26 }
 0x1e9   :  { %v199_v27 = vpop.xlane.xlu1 %198 }
 0x1ea   :  { %v200_v28 = vrot.slane %v199_v27, 4 }
 0x1ec   :  { %v201_v29 = vadd.f32 %v200_v28, %v199_v27 }
 0x1ee   :  { %v202_v30 = vrot.slane %v201_v29, 2 }
 0x1f0   :  { %v203_v31 = vadd.f32 %v202_v30, %v201_v29 }
 0x1f2   :  { %v204_v32 = vrot.slane %v203_v31, 1 }
 0x1f4   :  { %v205_v33 = vadd.f32 %v204_v32, %v203_v31 }
 0x1f6   :  { %271 = vpush %v205_v33 }
 0x227   :  { %s272_s1 = spop %271 }
 0x228   :  { %v207_v35 = vstv %s272_s1 }
 0x229   :  { %v208_v36 = vadd.f32 %v207_v35, %v194_v34 }
 0x22b   :  { %210 = vst.msk [vmem:[#allocation2] sm:$0x1] %vm76_vm5, %v208_v36 }
 0x232   :  { %v214_v39 = vld [vmem:[#allocation2] sm:$0x1] }
 0x233   :  { %v215_v40 = vmul.f32 0.125, %v214_v39 }
 0x235   :  { %v220_v41 = vrot.slane %v215_v40, %v219_v38 }
 0x237   :  { %222 = vperm.xlu1 %278, %v220_v41  }
 0x2b2   :  { %v223_v42 = vpop.permute.xlu1 %222 }
 0x2b3   :  { %225 = vst [vmem:[#allocation3] sm:$0xff] %v223_v42 }
 0x2b4   :  { %290 = shalt.err (!%p287_p4)
}
 0x2b5   :  { %235 = dma.vmem_to_hbm [thread:$0]  %s233_s3, 128, %s358_s4, [#allocation4]  }
 0x2b6   :  { %299 = dma.done.wait [#allocation4], 128  }
 0x2b7   :  { %300 = vsyncadd [#allocation4], 4294967168 }
 0x2b8   :  { %239 = vsyncpa [#allocation4], 1 }

</bundles_post_ra>
